<compile_context>
chip_gen: v6e
topology: v6e:2x2x1
jax: 0.10.0
libtpu: 0.0.40
codegen_flags: <defaults>
</compile_context>

<pallas_src>
import math
from functools import partial

import jax
import jax.numpy as jnp
from jax import lax
from jax.experimental import pallas as pl
from jax.experimental.pallas import tpu as pltpu


# ----------------------------------------------------------------------------
# helpers
# ----------------------------------------------------------------------------
def _round_up(x, m):
    return ((x + m - 1) // m) * m


def _vmem_budget_bytes():
    """Generation-aware VMEM budget for the kernel (v7x: ~41 MiB of 64 MiB)."""
    try:
        phys = int(pltpu.get_tpu_info().vmem_capacity_bytes)
    except Exception:
        phys = 0
    if phys <= 0:
        phys = 64 << 20            # assume the smallest generation (v7x) if unknown
    return int(min(phys * 0.65, 96 << 20))


def _largest_tile(k_pad, cap):
    """Largest multiple of 128 that divides k_pad and is <= cap (>= 128)."""
    cap = max(int(cap), 128)
    limit = min(k_pad, cap)
    best, t = 128, 128
    while t <= limit:
        if k_pad % t == 0:
            best = t
        t += 128
    return best


# ----------------------------------------------------------------------------
# Pallas kernel: negatives  exp((q @ queue) / T) * (1/Z)
# ----------------------------------------------------------------------------
def _moco_neg_kernel(invz_ref, q_ref, mem_ref, out_ref, *, inv_t, use_softmax):
    # q_ref: (B, D) bf16, mem_ref: (D, TK) bf16 -> (B, TK) f32 on the MXU.
    # Queue tile is already (contract, N) layout: no transpose needed.
    logits = jnp.dot(q_ref[...], mem_ref[...],
                     preferred_element_type=jnp.float32) * inv_t
    if use_softmax:
        out_ref[...] = logits
    else:
        # NOTE: no max-subtraction; assumes L2-normalized MoCo features so that
        # exp(1/T) stays finite in f32 (exp(1/0.07) ~ 1.6e6).
        out_ref[...] = jnp.exp(logits) * invz_ref[0]


@partial(jax.jit, static_argnames=("temperature", "use_softmax", "tk_max"))
def _moco_neg_forward(q_bf, memory_dk, invz, *, temperature, use_softmax, tk_max):
    B, D = q_bf.shape
    Dm, K_pad = memory_dk.shape
    assert Dm == D, "queue feature dim mismatch"
    mem_isz = jnp.dtype(memory_dk.dtype).itemsize
    q_isz = jnp.dtype(q_bf.dtype).itemsize

    # VMEM accounting: double-buffered queue tile + double-buffered f32 output
    # slab + resident q + Mosaic margin.  (For large B the output-slab term
    # dominates, which is exactly what this cap protects against on v7x.)
    budget = _vmem_budget_bytes()
    per_col = 2 * D * mem_isz + 2 * B * 4
    fixed = 2 * B * D * q_isz + (2 << 20)
    tk_fit = max((budget - fixed) // per_col, 128)
    TK = _largest_tile(K_pad, min(tk_max, tk_fit))
    grid = (K_pad // TK,)

    need = 2 * D * TK * mem_isz + 2 * B * TK * 4 + 2 * B * D * q_isz + (2 << 20)
    vmem_limit = int(min(max(need, 8 << 20), budget))

    cost = pl.CostEstimate(
        flops=2 * B * K_pad * D,
        transcendentals=0 if use_softmax else B * K_pad,
        bytes_accessed=K_pad * D * mem_isz + B * D * q_isz + B * K_pad * 4,
    )

    kernel = partial(_moco_neg_kernel, inv_t=1.0 / float(temperature),
                     use_softmax=use_softmax)
    return pl.pallas_call(
        kernel,
        out_shape=jax.ShapeDtypeStruct((B, K_pad), jnp.float32),
        grid=grid,
        in_specs=[
            pl.BlockSpec(memory_space=pltpu.MemorySpace.SMEM),   # invz scalar (1,)
            pl.BlockSpec((B, D), lambda j: (0, 0)),              # q, VMEM-resident
            pl.BlockSpec((D, TK), lambda j: (0, j)),             # queue tile, streamed
        ],
        out_specs=pl.BlockSpec((B, TK), lambda j: (0, j)),       # lane-dense slab
        compiler_params=pltpu.CompilerParams(
            dimension_semantics=("parallel",),
            vmem_limit_bytes=vmem_limit,
        ),
        cost_estimate=cost,
    )(invz, q_bf, memory_dk)


# ----------------------------------------------------------------------------
# jitted glue: positive logit, pad-slice, concat.
# TODO(synk): fuse the positive column into the kernel output to drop the
#             remaining (B, 1+K) concatenate copy pass.
# ----------------------------------------------------------------------------
@partial(jax.jit, static_argnames=("inv_t", "use_softmax", "K"))
def _finalize(neg_padded, q32, k32, invz, *, inv_t, use_softmax, K):
    l_pos = jnp.sum(q32 * k32, axis=1, keepdims=True) * inv_t       # (B, 1)
    neg = neg_padded[:, :K]                                         # drop pad columns
    if use_softmax:
        return jnp.concatenate([l_pos, neg], axis=1)
    pos = jnp.exp(l_pos) * invz[0]
    return jnp.concatenate([pos, neg], axis=1)


# ----------------------------------------------------------------------------
# in-place (donated) queue updates on the (D, K_pad) layout
# ----------------------------------------------------------------------------
@partial(jax.jit, donate_argnums=(0,))
def _enqueue_contiguous(mem_dk, k_cols, start):
    zero = jnp.zeros((), dtype=jnp.int32)
    return lax.dynamic_update_slice(mem_dk, k_cols, (zero, start))


@partial(jax.jit, donate_argnums=(0,))
def _enqueue_scatter(mem_dk, k_cols, ids):
    return mem_dk.at[:, ids].set(k_cols)


# ----------------------------------------------------------------------------
# module
# ----------------------------------------------------------------------------
class MemoryMoCoPallas:
    """Fixed-size queue with momentum encoder (Pallas forward)."""

    def __init__(self, inputSize, outputSize, K, T=0.07, use_softmax=False,
                 queue_dtype=jnp.bfloat16, tk_max=8192):
        self.inputSize = int(inputSize)
        self.outputSize = int(outputSize)
        self.queueSize = int(K)
        self.T = float(T)
        self.index = 0
        self.use_softmax = bool(use_softmax)
        self.queue_dtype = queue_dtype
        self.tk_max = max((int(tk_max) // 128) * 128, 128)
        self.Z = -1.0                                    # 'params' buffer, starts at -1

        # Pad K so a large lane-dense tile (multiple of 128) divides it evenly.
        tk0 = min(self.tk_max, _round_up(self.queueSize, 128))
        self.paddedK = _round_up(self.queueSize, tk0)

        stdv = 1.0 / math.sqrt(inputSize / 3)
        key = jax.random.PRNGKey(1234)
        mem = (jax.random.uniform(key, (self.queueSize, inputSize), dtype=jnp.float32)
               * (2.0 * stdv) - stdv)                    # torch.rand * 2*stdv - stdv
        # Queue stored transposed (D, K_pad) in bf16: lane-dense streaming tiles,
        # no per-tile transpose, half the HBM bytes of an f32 queue.
        mem_dk = jnp.zeros((self.inputSize, self.paddedK), dtype=queue_dtype)
        self.memory = mem_dk.at[:, :self.queueSize].set(mem.T.astype(queue_dtype))

    def queue_kd(self):
        """Current queue as (K, D) (PyTorch buffer layout); fresh array."""
        return self.memory[:, :self.queueSize].T

    def forward(self, q, k):
        batchSize = q.shape[0]
        assert batchSize <= self.queueSize, "batch must not exceed queue size"
        q32 = q.astype(jnp.float32)
        k32 = lax.stop_gradient(k.astype(jnp.float32))
        q_bf = q32.astype(self.queue_dtype)              # matmul operand == queue dtype

        invz = jnp.array([1.0 if self.Z < 0 else 1.0 / self.Z], dtype=jnp.float32)

        # --- negatives: exp(q @ queue / T) * (1/Z), streamed over the queue (Pallas)
        neg_padded = _moco_neg_forward(q_bf, self.memory, invz,
                                       temperature=self.T,
                                       use_softmax=self.use_softmax,
                                       tk_max=self.tk_max)

        # --- positive logit, pad-slice and concat (single jitted glue pass)
        out = _finalize(neg_padded, q32, k32, invz,
                        inv_t=1.0 / self.T, use_softmax=self.use_softmax,
                        K=self.queueSize)

        if (not self.use_softmax) and self.Z < 0:
            # One-time data-dependent normalization constant (PyTorch semantics).
            # TODO(synk): host round-trip for Z (params[0].item()) + extra pass on call 1.
            self.Z = float(jnp.mean(out) * self.outputSize)
            out = out / self.Z
        # torch's .squeeze() is a no-op for batchSize > 1

        # --- queue update: overwrite B columns of the (D, K_pad) queue in place
        #     (donated dynamic_update_slice; no full-queue scatter copy).
        k_cols = k32.T.astype(self.queue_dtype)          # (D, B)
        if self.index + batchSize <= self.queueSize:
            self.memory = _enqueue_contiguous(self.memory, k_cols,
                                              jnp.int32(self.index))
        else:                                            # rare wrap inside a batch
            ids = (jnp.arange(batchSize, dtype=jnp.int32) + self.index) % self.queueSize
            self.memory = _enqueue_scatter(self.memory, k_cols, ids)
        self.index = (self.index + batchSize) % self.queueSize
        return out

    __call__ = forward


# ----------------------------------------------------------------------------
# pure-JAX reference (accounts for bf16 queue/operand rounding)
# ----------------------------------------------------------------------------
def _reference_forward(q, k, memory_kd, T, use_softmax, Z, queue_dtype):
    qf = q.astype(jnp.float32)
    kf = k.astype(jnp.float32)
    qm = qf.astype(queue_dtype).astype(jnp.float32)      # same rounding as the kernel
    memf = memory_kd.astype(jnp.float32)
    l_pos = jnp.sum(qf * kf, axis=1, keepdims=True)
    l_neg = jnp.dot(qm, memf.T, precision=jax.lax.Precision.HIGHEST)
    out = jnp.concatenate([l_pos, l_neg], axis=1) / T
    if use_softmax:
        return out
    out = jnp.exp(out)
    if Z is not None:
        out = out / Z
    return out


if __name__ == "__main__":
    B, D, K, outputSize = 8, 32, 128, 4096
    T = 0.07

    key = jax.random.PRNGKey(0)
    kq, kk_ = jax.random.split(key)
    q = jax.random.normal(kq, (B, D), dtype=jnp.float32)
    k = jax.random.normal(kk_, (B, D), dtype=jnp.float32)
    # L2-normalize as MoCo features are (keeps exp(logits/T) well-behaved in f32)
    q = q / jnp.linalg.norm(q, axis=1, keepdims=True)
    k = k / jnp.linalg.norm(k, axis=1, keepdims=True)

    # --- NCE path (use_softmax=False): first call sets Z, second uses 1/Z in-kernel
    moco = MemoryMoCoPallas(D, outputSize, K, T=T, use_softmax=False)
    mem_before = moco.queue_kd()                         # (K, D) snapshot, fresh buffer

    out = jax.block_until_ready(moco(q, k))
    assert out.shape == (B, 1 + K)

    ref_unnorm = _reference_forward(q, k, mem_before, T, False, None, moco.queue_dtype)
    Z_ref = float(jnp.mean(ref_unnorm) * outputSize)
    ref = ref_unnorm / Z_ref
    assert jnp.allclose(out, ref, rtol=5e-3, atol=1e-6), "mismatch vs reference (call 1)"

    out2 = jax.block_until_ready(moco(q, k))
    mem_after_first = mem_before.at[jnp.arange(B) % K].set(k.astype(moco.queue_dtype))
    ref2 = _reference_forward(q, k, mem_after_first, T, False, moco.Z, moco.queue_dtype)
    assert jnp.allclose(out2, ref2, rtol=5e-3, atol=1e-6), "mismatch vs reference (call 2)"

    # --- softmax path (plain logits / T)
    moco_sm = MemoryMoCoPallas(D, outputSize, K, T=T, use_softmax=True)
    mem_sm = moco_sm.queue_kd()
    out_sm = jax.block_until_ready(moco_sm(q, k))
    ref_sm = _reference_forward(q, k, mem_sm, T, True, None, moco_sm.queue_dtype)
    assert jnp.allclose(out_sm, ref_sm, rtol=5e-3, atol=1e-5), "mismatch vs reference (softmax)"

    print("KERNEL_OK")
</pallas_src>

<mosaic_0001>
module attributes {stable_mosaic.version = 11 : i64} {
  func.func @_moco_neg_kernel(%arg0: i32, %arg1: memref<1xf32, #tpu.memory_space<smem>>, %arg2: memref<8x32xbf16, #tpu.memory_space<vmem>>, %arg3: memref<32x128xbf16, #tpu.memory_space<vmem>>, %arg4: memref<8x128xf32, #tpu.memory_space<vmem>>) attributes {dimension_semantics = [#tpu.dimension_semantics<parallel>], iteration_bounds = array<i64: 1>, scalar_prefetch = 0 : i64, scratch_operands = 0 : i64, tpu.core_type = #tpu.core_type<tc>, window_params = [{transform_indices = @transform_0, window_bounds = array<i64: 1>}, {pipeline_mode = #tpu.pipeline_mode<synchronous>, transform_indices = @transform_1, window_bounds = array<i64: 8, 32>}, {transform_indices = @transform_2, window_bounds = array<i64: 32, 128>}, {transform_indices = @transform_3, window_bounds = array<i64: 8, 128>}]} {
    %c0 = arith.constant 0 : index
    %c0_0 = arith.constant 0 : index
    %0 = vector.load %arg2[%c0, %c0_0] : memref<8x32xbf16, #tpu.memory_space<vmem>>, vector<8x32xbf16>
    %c0_1 = arith.constant 0 : index
    %c0_2 = arith.constant 0 : index
    %1 = vector.load %arg3[%c0_1, %c0_2] : memref<32x128xbf16, #tpu.memory_space<vmem>>, vector<32x128xbf16>
    %cst = arith.constant dense<0.000000e+00> : vector<8x128xf32>
    %2 = tpu.matmul %0, %1, %cst {dimension_numbers = #tpu.dot_dimension_numbers<[1], [0], [0], [1], [0, 0, 1, 1], [], []>} : vector<8x32xbf16>, vector<32x128xbf16>, vector<8x128xf32> -> vector<8x128xf32>
    %cst_3 = arith.constant 14.2857141 : f32
    %3 = vector.broadcast %cst_3 : f32 to vector<8x128xf32>
    %4 = arith.mulf %2, %3 : vector<8x128xf32>
    %5 = math.exp %4 : vector<8x128xf32>
    %c0_4 = arith.constant 0 : index
    %6 = memref.load %arg1[%c0_4] : memref<1xf32, #tpu.memory_space<smem>>
    %7 = vector.broadcast %6 : f32 to vector<8x128xf32>
    %8 = arith.mulf %5, %7 : vector<8x128xf32>
    %c0_5 = arith.constant 0 : index
    %c0_6 = arith.constant 0 : index
    %9 = vector.load %arg4[%c0_5, %c0_6] : memref<8x128xf32, #tpu.memory_space<vmem>>, vector<8x128xf32>
    tpu.vector_store %arg4[%c0_5, %c0_6], %8 {strides = array<i32>} : memref<8x128xf32, #tpu.memory_space<vmem>>, vector<8x128xf32>,
    return
  }
  func.func @transform_0(%arg0: i32) -> i32 {
    %c0_i32 = arith.constant 0 : i32
    %c0_i32_0 = arith.constant 0 : i32
    return %c0_i32 : i32
  }
  func.func @transform_1(%arg0: i32) -> (i32, i32) {
    %c0_i32 = arith.constant 0 : i32
    %c0_i32_0 = arith.constant 0 : i32
    %c0_i32_1 = arith.constant 0 : i32
    return %c0_i32, %c0_i32_0 : i32, i32
  }
  func.func @transform_2(%arg0: i32) -> (i32, i32) {
    %c0_i32 = arith.constant 0 : i32
    %c0_i32_0 = arith.constant 0 : i32
    return %c0_i32, %arg0 : i32, i32
  }
  func.func @transform_3(%arg0: i32) -> (i32, i32) {
    %c0_i32 = arith.constant 0 : i32
    %c0_i32_0 = arith.constant 0 : i32
    return %c0_i32, %arg0 : i32, i32
  }
}

</mosaic_0001>

<bundles_post_ra>
// kernel: _moco_neg_forward.1
= control target key start
LH: loop header
LB: loop body
LE: loop exit
PB: predicated region body
PF: predicated region fallthrough
CT: control target
= control target key end

     0   :  { %9 = vsyncpa [#allocation4], 0  ;;  %s257_s0 = inlined_call_operand.<no memory space> [shape: f32[1], index: 0, kind: input, shape index: {}]   ;;  %s258_s1 = inlined_call_operand.hbm [shape: bf16[8,32], index: 1, kind: input, shape index: {}]   ;;  %s259_s2 = inlined_call_operand.hbm [shape: bf16[32,128], index: 2, kind: input, shape index: {}]   ;;  %s260_s3 = inlined_call_operand.hbm [shape: f32[8,128], index: 3, kind: output, shape index: {}]  }
   0x1   :  { %10 = vsyncpa [#allocation7], 0 }
   0x2   :  { %11 = vsyncpa [#allocation5], 0  ;;  %s218_s12 = smov [#allocation3]   ;;  %s219_s14 = smov [#allocation6]  }
   0x3   :  { %s20_s13 = sshll.u32 %s218_s12, 4  ;;  %s29_s15 = sshll.u32 %s219_s14, 4  ;;  %s21_s13 = int_to_ptr.vmem [resolvable:$true] %s20_s13  ;;  %s30_s15 = int_to_ptr.vmem [resolvable:$true] %s29_s15 }
   0x4   :  { %s160_s16 = scalar_lea.vmem %s21_s13, 64  ;;  %p165_p1 = scmp.lt.s32.totalorder %s21_s13, %s21_s13 }
   0x5   :  { %p161_p0 = scmp.ne.s32.totalorder %s21_s13, %s160_s16  ;;  %p166_p2 = scmp.lt.s32.totalorder %s160_s16, %s160_s16 }
   0x7   :  { %p167_p3 = por %p166_p2, %p165_p1 }
   0x9   :  { %p168_p4 = pnand %p167_p3, %p161_p0 }
   0xb   :  { %171 = shalt.err (!%p168_p4)
}
   0xc   :  { %23 = dma.hbm_to_vmem [thread:$0]  %s258_s1, 64, %s21_s13, [#allocation4]  }
   0xd   :  { %s180_s19 = scalar_lea.vmem %s30_s15, 256  ;;  %p185_p6 = scmp.lt.s32.totalorder %s30_s15, %s30_s15 }
   0xe   :  { %p181_p5 = scmp.ne.s32.totalorder %s30_s15, %s180_s19  ;;  %p186_p7 = scmp.lt.s32.totalorder %s180_s19, %s180_s19 }
  0x10   :  { %p187_p8 = por %p186_p7, %p185_p6 }
  0x12   :  { %p188_p9 = pnand %p187_p8, %p181_p5 }
  0x14   :  { %191 = shalt.err (!%p188_p9)
}
  0x15   :  { %s220_s20 = smov 64   ;;  %s221_s21 = smov 4  }
  0x16   :  { %35 = dma.hbm_to_vmem [thread:$0]  %s259_s2, 256, %s30_s15, [#allocation7], %s220_s20, %s220_s20, %s221_s21  }
  0x17   :  { %212 = dma.done.wait [#allocation4], 64  }
  0x18   :  { %213 = vsyncadd [#allocation4], 4294967232 }
  0x19   :  { %214 = dma.done.wait [#allocation7], 256  }
  0x1a   :  { %215 = vsyncadd [#allocation7], 4294967040  ;;  %v222_v0 = vmov 0.0   ;;  %vm223_vm0 = vmmov 0   ;;  %v148_v1 = vld [vmem:[#allocation6 + $0x8] sm:$0xff]   ;;  %v149_v2 = vld [vmem:[#allocation6] sm:$0xff]   ;;  %v108_v10 = vstv %s257_s0 }
  0x1b   :  { %133 = vmatprep.subr.bf16.mxu0 %v222_v0  ;;  %137 = vmatprep.mubr.msk.bf16.mxu0 %vm223_vm0, %v222_v0  ;;  %v43_v3 = vld [vmem:[#allocation3] sm:$0xf]  ;;  %vm60_vm1 = vcmask 261120   ;;  %s224_s24 = smov [#allocation8]  }
  0x1c   :  { %134 = vmatpush3.bf16.msra.mxu0 %v148_v1  ;;  %s117_s25 = sshll.u32 %s224_s24, 4  ;;  %s118_s25 = int_to_ptr.vmem [resolvable:$true] %s117_s25 }
  0x1d   :  { %135 = vmatprep.subr.bf16.mxu0 %v222_v0  ;;  %s192_s26 = scalar_lea.vmem %s118_s25, 128  ;;  %p197_p11 = scmp.lt.s32.totalorder %s118_s25, %s118_s25 }
  0x1e   :  { %p193_p10 = scmp.ne.s32.totalorder %s118_s25, %s192_s26  ;;  %p198_p12 = scmp.lt.s32.totalorder %s192_s26, %s192_s26 }
  0x20   :  { %136 = vmatpush3.bf16.msra.mxu0 %v149_v2  ;;  %p199_p13 = por %p198_p12, %p197_p11 }
  0x22   :  { %p200_p0 = pnand %p199_p13, %p193_p10 }
  0x23   :  { %138 = vmatmul.mubr.msk.bf16.vlgmr.msra.gmra.mxu0 %vm60_vm1, %v43_v3 }
  0xe3   :  { %v98_v4 = vpop.f32.mrf.mxu0 }
  0xe4   :  { %v104_v5 = vmul.f32 14.285714, %v98_v4 }
  0xe5   :  { %v139_v6 = vpop.f32.mrf.mxu0 }
  0xe6   :  { %v105_v7 = vmul.f32 1.442695, %v104_v5 }
  0xe7   :  { %v101_v8 = vpop.f32.mrf.mxu0 }
  0xe8   :  { %150 = vpow2.f32 %v105_v7 }
  0xe9   :  { %v140_v9 = vpop.f32.mrf.mxu0 }
  0xf5   :  { %v151_v11 = vpop.eup %150 }
  0xf6   :  { %v109_v12 = vmul.f32 %v151_v11, %v108_v10 }
  0xf8   :  { %110 = vst [vmem:[#allocation8] sm:$0xff] %v109_v12 }
  0xf9   :  { %203 = shalt.err (!%p200_p0)
}
  0xfa   :  { %120 = dma.vmem_to_hbm [thread:$0]  %s118_s25, 128, %s260_s3, [#allocation5]  }
  0xfb   :  { %216 = dma.done.wait [#allocation5], 128  }
  0xfc   :  { %217 = vsyncadd [#allocation5], 4294967168 }
  0xfd   :  { %124 = vsyncpa [#allocation4], 1 }
  0xfe   :  { %125 = vsyncpa [#allocation7], 1 }
  0xff   :  { %126 = vsyncpa [#allocation5], 1 }

</bundles_post_ra>
